<compile_context>
chip_gen: v5e
topology: v5e:2x2
jax: 0.10.0
libtpu: 0.0.40
codegen_flags: <defaults>
</compile_context>

<pallas_src>
import functools

import jax
import jax.numpy as jnp
from jax.experimental import pallas as pl
from jax.experimental.pallas import tpu as pltpu

LANES = 128


def _pad8(n):
    return ((n + 7) // 8) * 8


# -----------------------------------------------------------------------------
# Weight packing: all 13 parameter tensors -> one (rows, 128) f32 slab.
#
#  seg A rows [0 , I)     lanes [0 ,H)    : W_proc0^T (I,H)
#        row   I          lanes [0 ,H)    : b_proc0
#  seg B rows [rB, rB+H)  lanes [0 ,H)    : W_query^T
#                         lanes [H ,2H)   : W_proc1[:, :H]^T   (proc0 part)
#                         lanes [2H,3H)   : W_address^T
#                         lanes [3H,3H+O) : W_act^T
#        row   rB+H       same lanes      : [b_query | b_proc1 | b_address | b_act]
#  seg C rows [rC, rC+M)  lanes [0 ,H)    : W_proc1[:, H:]^T   (read part)
#                         lanes [H ,2H)   : W_message (torch (M,H) layout)
#                         lane   2H       : b_message (column)
# -----------------------------------------------------------------------------
def pack_params(params):
    f32 = jnp.float32
    wp0 = jnp.asarray(params["w_proc0"], f32)     # (H, I)
    H, I = wp0.shape
    wm = jnp.asarray(params["w_message"], f32)    # (M, H)
    M = wm.shape[0]
    wact = jnp.asarray(params["w_act"], f32)      # (O, H)
    O = wact.shape[0]
    wq = jnp.asarray(params["w_query"], f32)      # (H, H)
    wp1 = jnp.asarray(params["w_proc1"], f32)     # (H, M + H)
    wa = jnp.asarray(params["w_address"], f32)    # (H, H)

    assert 3 * H + O <= LANES and 2 * H + 1 <= LANES, "sizes too large for slab packing"

    rB = _pad8(I + 1)
    rC = rB + _pad8(H + 1)
    rows = rC + _pad8(M)

    slab = jnp.zeros((rows, LANES), f32)
    # segment A
    slab = slab.at[0:I, 0:H].set(wp0.T)
    slab = slab.at[I, 0:H].set(jnp.asarray(params["b_proc0"], f32))
    # segment B : fused [query | proc1(proc0-part) | address | act]
    wB = jnp.concatenate([wq.T, wp1[:, :H].T, wa.T, wact.T], axis=1)          # (H, 3H+O)
    bB = jnp.concatenate([jnp.asarray(params["b_query"], f32),
                          jnp.asarray(params["b_proc1"], f32),
                          jnp.asarray(params["b_address"], f32),
                          jnp.asarray(params["b_act"], f32)])                 # (3H+O,)
    slab = slab.at[rB:rB + H, 0:3 * H + O].set(wB)
    slab = slab.at[rB + H, 0:3 * H + O].set(bB)
    # segment C
    slab = slab.at[rC:rC + M, 0:H].set(wp1[:, H:].T)
    slab = slab.at[rC:rC + M, H:2 * H].set(wm)
    slab = slab.at[rC:rC + M, 2 * H].set(jnp.asarray(params["b_message"], f32))

    return {"slab": slab, "dims": (I, H, M, O), "rB": rB, "rC": rC}


# -----------------------------------------------------------------------------
# Kernels
# -----------------------------------------------------------------------------
def _recurrent_core(mem, query, proc1_part, wB, bB, wbot, wm, bm, H):
    """Memory-dependent half of one ComplexNet step.

    Returns (la, new_mem) where `la` is the full 128-lane fused output row:
    lanes [2H,3H) are the address logits, lanes [3H,3H+O) are the action.
    """
    f32 = jnp.float32
    # read = memory @ query, produced directly as a column (lane reduce, VPU+XLU)
    read_col = jnp.sum(mem * query, axis=1, keepdims=True)                    # (M, 1)
    # proc1 = proc0-contribution + read-contribution (sublane reduce)
    proc1 = proc1_part + jnp.sum(read_col * wbot, axis=0, keepdims=True)      # (1, H)
    # fused [.. | address_logits | action | 0] over all 128 lanes (same MXU cost)
    la = jnp.dot(proc1, wB, preferred_element_type=f32) + bB                  # (1, 128)
    logits = la[:, 2 * H:3 * H]                                               # (1, H)
    logits = logits - jnp.max(logits, axis=-1, keepdims=True)
    e = jnp.exp(logits)
    address = e * pl.reciprocal(jnp.sum(e, axis=-1, keepdims=True), approx=True)
    # message = fc_message(proc1) produced directly as a column (no transpose)
    message_col = jnp.sum(wm * proc1, axis=1, keepdims=True) + bm             # (M, 1)
    new_mem = mem + message_col * address                                     # (M, H)
    return la, new_mem


def complexnet_step_kernel(x_ref, mem_ref, slab_ref, act_ref, new_mem_ref,
                           *, I, H, M, rB, rC):
    f32 = jnp.float32
    mem = mem_ref[...]                                    # (M, H)
    x_col = x_ref[...]                                    # (I, 1)

    w0 = slab_ref[0:I, 0:H]
    b0 = slab_ref[I:I + 1, 0:H]
    wB = slab_ref[rB:rB + H, :]                           # (H, 128)
    bB = slab_ref[rB + H:rB + H + 1, :]                   # (1, 128)
    wbot = slab_ref[rC:rC + M, 0:H]                       # (M, H)
    wm = slab_ref[rC:rC + M, H:2 * H]                     # (M, H)
    bm = slab_ref[rC:rC + M, 2 * H:2 * H + 1]             # (M, 1)

    # fc_proc_0 as VPU broadcast + XLU sublane reduce (keeps MXU off the chain head)
    proc0 = jnp.sum(x_col * w0, axis=0, keepdims=True) + b0                   # (1, H)
    # fused [query | proc1_part | ...] MXU dot
    qp = jnp.dot(proc0, wB, preferred_element_type=f32) + bB                  # (1, 128)
    query = qp[:, 0:H]
    proc1_part = qp[:, H:2 * H]

    la, new_mem = _recurrent_core(mem, query, proc1_part, wB, bB, wbot, wm, bm, H)
    act_ref[...] = la                      # unmasked 128-lane store; wrapper slices action
    new_mem_ref[...] = new_mem             # in-place via input_output_aliases


def complexnet_rollout_kernel(xs_ref, mem_ref, slab_ref, acts_ref, new_mem_ref,
                              qp_s, *, I, H, M, rB, rC):
    f32 = jnp.float32
    t = pl.program_id(0)

    wB = slab_ref[rB:rB + H, :]                           # (H, 128)
    bB = slab_ref[rB + H:rB + H + 1, :]                   # (1, 128)

    @pl.when(t == 0)
    def _init():
        # Everything that does not depend on memory is batched over all T steps.
        w0 = slab_ref[0:I, 0:H]
        b0 = slab_ref[I:I + 1, 0:H]
        proc0_all = jnp.dot(xs_ref[...], w0, preferred_element_type=f32) + b0  # (T, H)
        qp_s[...] = jnp.dot(proc0_all, wB, preferred_element_type=f32) + bB    # (T, 128)
        new_mem_ref[...] = mem_ref[...]    # memory carry lives in the resident output block

    mem = new_mem_ref[...]                                # (M, H) carried across steps
    row = qp_s[pl.ds(t, 1), :]                            # (1, 128)
    query = row[:, 0:H]
    proc1_part = row[:, H:2 * H]

    wbot = slab_ref[rC:rC + M, 0:H]
    wm = slab_ref[rC:rC + M, H:2 * H]
    bm = slab_ref[rC:rC + M, 2 * H:2 * H + 1]

    la, new_mem = _recurrent_core(mem, query, proc1_part, wB, bB, wbot, wm, bm, H)
    acts_ref[pl.ds(t, 1), :] = la                         # one lane-dense row per step
    new_mem_ref[...] = new_mem


# -----------------------------------------------------------------------------
# Wrappers (jitted, memory buffer donated so the in-place alias is real)
# -----------------------------------------------------------------------------
def make_complexnet_step(packed, activation=None):
    I, H, M, O = packed["dims"]
    rB, rC = packed["rB"], packed["rC"]
    rows = packed["slab"].shape[0]
    vm = pltpu.MemorySpace.VMEM

    kernel = functools.partial(complexnet_step_kernel, I=I, H=H, M=M, rB=rB, rC=rC)
    cost = pl.CostEstimate(
        flops=2 * (I * H + 2 * H * LANES + 4 * M * H),
        transcendentals=H + 1,
        bytes_accessed=4 * (rows * LANES + 2 * M * H + I + LANES))

    call = pl.pallas_call(
        kernel,
        out_shape=(jax.ShapeDtypeStruct((1, LANES), jnp.float32),
                   jax.ShapeDtypeStruct((M, H), jnp.float32)),
        in_specs=[pl.BlockSpec(memory_space=vm)] * 3,
        out_specs=(pl.BlockSpec(memory_space=vm), pl.BlockSpec(memory_space=vm)),
        input_output_aliases={1: 1},           # memory -> new_memory, in place
        cost_estimate=cost,
    )

    @functools.partial(jax.jit, donate_argnums=(1,))
    def step(x, memory, slab):
        x_col = x.reshape(I, 1).astype(jnp.float32)
        la, new_mem = call(x_col, memory.astype(jnp.float32), slab)
        action = la[0, 3 * H:3 * H + O]
        if activation == "sig":
            action = jnp.tanh(0.5 * action)    # == (sigmoid(a) - 0.5) * 2
        return action, new_mem

    return step


def make_complexnet_rollout(packed, T, activation=None):
    I, H, M, O = packed["dims"]
    rB, rC = packed["rB"], packed["rC"]
    rows = packed["slab"].shape[0]

    kernel = functools.partial(complexnet_rollout_kernel, I=I, H=H, M=M, rB=rB, rC=rC)
    cost = pl.CostEstimate(
        flops=2 * T * (I * H + 2 * H * LANES + 4 * M * H),
        transcendentals=T * (H + 1),
        bytes_accessed=4 * (rows * LANES + 2 * M * H + T * I + T * LANES))

    grid_spec = pltpu.PrefetchScalarGridSpec(
        num_scalar_prefetch=0,
        grid=(T,),
        in_specs=[
            pl.BlockSpec((T, I), lambda t: (0, 0)),         # xs: VMEM-resident
            pl.BlockSpec((M, H), lambda t: (0, 0)),         # memory: loaded once
            pl.BlockSpec((rows, LANES), lambda t: (0, 0)),  # weight slab: resident
        ],
        out_specs=(
            pl.BlockSpec((T, LANES), lambda t: (0, 0)),     # lane-dense action rows
            pl.BlockSpec((M, H), lambda t: (0, 0)),         # final memory (resident carry)
        ),
        scratch_shapes=[pltpu.VMEM((T, LANES), jnp.float32)],   # [query|proc1_part|..] per step
    )

    call = pl.pallas_call(
        kernel,
        out_shape=(jax.ShapeDtypeStruct((T, LANES), jnp.float32),
                   jax.ShapeDtypeStruct((M, H), jnp.float32)),
        grid_spec=grid_spec,
        input_output_aliases={1: 1},
        compiler_params=pltpu.CompilerParams(dimension_semantics=("arbitrary",)),
        cost_estimate=cost,
    )

    @functools.partial(jax.jit, donate_argnums=(1,))
    def rollout(xs, memory, slab):
        acts_pad, new_mem = call(xs.astype(jnp.float32), memory.astype(jnp.float32), slab)
        actions = acts_pad[:, 3 * H:3 * H + O]
        if activation == "sig":
            actions = jnp.tanh(0.5 * actions)
        return actions, new_mem

    return rollout


# -----------------------------------------------------------------------------
# Deterministic init (mirrors nn.Linear: U(-1/sqrt(fan_in), 1/sqrt(fan_in)))
# and a pure-JAX reference of the PyTorch forward.
# -----------------------------------------------------------------------------
def _init_linear(key, in_f, out_f):
    kw, kb = jax.random.split(key)
    bound = 1.0 / (in_f ** 0.5)
    w = jax.random.uniform(kw, (out_f, in_f), jnp.float32, -bound, bound)
    b = jax.random.uniform(kb, (out_f,), jnp.float32, -bound, bound)
    return w, b


def make_params(key, input_size, out_size, hidden_size, memory_size):
    ks = jax.random.split(key, 6)
    p = {}
    p["w_proc0"], p["b_proc0"] = _init_linear(ks[0], input_size, hidden_size)
    p["w_query"], p["b_query"] = _init_linear(ks[1], hidden_size, hidden_size)
    p["w_proc1"], p["b_proc1"] = _init_linear(ks[2], memory_size + hidden_size, hidden_size)
    p["w_message"], p["b_message"] = _init_linear(ks[3], hidden_size, memory_size)
    p["w_address"], p["b_address"] = _init_linear(ks[4], hidden_size, hidden_size)
    p["w_act"], p["b_act"] = _init_linear(ks[5], hidden_size, out_size)
    return p


def reference_forward(x, memory, p, activation=None):
    proc0 = x @ p["w_proc0"].T + p["b_proc0"]
    query = proc0 @ p["w_query"].T + p["b_query"]
    read = memory @ query
    combined = jnp.concatenate([proc0, read])
    proc1 = combined @ p["w_proc1"].T + p["b_proc1"]
    message = proc1 @ p["w_message"].T + p["b_message"]
    address = jax.nn.softmax(proc1 @ p["w_address"].T + p["b_address"], axis=-1)
    new_memory = memory + jnp.outer(message, address)
    action = proc1 @ p["w_act"].T + p["b_act"]
    if activation == "sig":
        action = (jax.nn.sigmoid(action) - 0.5) * 2
    return action, new_memory


if __name__ == "__main__":
    input_size, out_size, hidden_size, memory_size, T = 4, 1, 32, 8, 8

    key = jax.random.PRNGKey(0)
    kp, kx, km, ks = jax.random.split(key, 4)
    params = make_params(kp, input_size, out_size, hidden_size, memory_size)
    packed = pack_params(params)          # one-time layout conversion / slab packing

    x = jax.random.normal(kx, (input_size,), dtype=jnp.float32)
    xs = jax.random.normal(ks, (T, input_size), dtype=jnp.float32)
    memory0 = jax.random.normal(km, (memory_size, hidden_size), dtype=jnp.float32) * 0.05

    # References are computed BEFORE the kernel calls: memory copies are donated.
    ref_action, ref_new_memory = reference_forward(x, memory0, params, activation=None)
    ref_action_sig, _ = reference_forward(x, memory0, params, activation="sig")
    ref_roll_actions = []
    ref_mem = memory0
    for t in range(T):
        a, ref_mem = reference_forward(xs[t], ref_mem, params, activation=None)
        ref_roll_actions.append(a)
    ref_roll_actions = jnp.stack(ref_roll_actions)
    ref_roll_memory = ref_mem

    step = make_complexnet_step(packed, activation=None)
    step_sig = make_complexnet_step(packed, activation="sig")
    rollout = make_complexnet_rollout(packed, T, activation=None)

    action, new_memory = step(x, jnp.copy(memory0), packed["slab"])
    action_sig, _ = step_sig(x, jnp.copy(memory0), packed["slab"])
    roll_actions, roll_memory = rollout(xs, jnp.copy(memory0), packed["slab"])
    jax.block_until_ready((action, new_memory, action_sig, roll_actions, roll_memory))

    assert action.shape == (out_size,)
    assert new_memory.shape == (memory_size, hidden_size)
    assert roll_actions.shape == (T, out_size)
    assert roll_memory.shape == (memory_size, hidden_size)
    assert jnp.allclose(action, ref_action, atol=2e-3, rtol=2e-3)
    assert jnp.allclose(action_sig, ref_action_sig, atol=2e-3, rtol=2e-3)
    assert jnp.allclose(new_memory, ref_new_memory, atol=2e-3, rtol=2e-3)
    assert jnp.allclose(roll_actions, ref_roll_actions, atol=2e-3, rtol=2e-3)
    assert jnp.allclose(roll_memory, ref_roll_memory, atol=2e-3, rtol=2e-3)

    print("KERNEL_OK")
</pallas_src>

<mosaic_0001>
module attributes {stable_mosaic.version = 11 : i64} {
  func.func @complexnet_step_kernel(%arg0: memref<4x1xf32, #tpu.memory_space<vmem>>, %arg1: memref<8x32xf32, #tpu.memory_space<vmem>>, %arg2: memref<56x128xf32, #tpu.memory_space<vmem>>, %arg3: memref<1x128xf32, #tpu.memory_space<vmem>>, %arg4: memref<8x32xf32, #tpu.memory_space<vmem>>) attributes {dimension_semantics = [], scalar_prefetch = 0 : i64, scratch_operands = 0 : i64, tpu.core_type = #tpu.core_type<tc>} {
    %c0 = arith.constant 0 : index
    %c0_0 = arith.constant 0 : index
    %0 = vector.load %arg1[%c0, %c0_0] : memref<8x32xf32, #tpu.memory_space<vmem>>, vector<8x32xf32>
    %c0_1 = arith.constant 0 : index
    %c0_2 = arith.constant 0 : index
    %1 = vector.load %arg0[%c0_1, %c0_2] : memref<4x1xf32, #tpu.memory_space<vmem>>, vector<4x1xf32>
    %c0_3 = arith.constant 0 : index
    %c0_4 = arith.constant 0 : index
    %2 = vector.load %arg2[%c0_3, %c0_4] : memref<56x128xf32, #tpu.memory_space<vmem>>, vector<4x32xf32>
    %c4 = arith.constant 4 : index
    %c0_5 = arith.constant 0 : index
    %3 = vector.load %arg2[%c4, %c0_5] : memref<56x128xf32, #tpu.memory_space<vmem>>, vector<1x32xf32>
    %c8 = arith.constant 8 : index
    %c0_6 = arith.constant 0 : index
    %4 = vector.load %arg2[%c8, %c0_6] : memref<56x128xf32, #tpu.memory_space<vmem>>, vector<32x128xf32>
    %c40 = arith.constant 40 : index
    %c0_7 = arith.constant 0 : index
    %5 = vector.load %arg2[%c40, %c0_7] : memref<56x128xf32, #tpu.memory_space<vmem>>, vector<1x128xf32>
    %c48 = arith.constant 48 : index
    %c0_8 = arith.constant 0 : index
    %6 = vector.load %arg2[%c48, %c0_8] : memref<56x128xf32, #tpu.memory_space<vmem>>, vector<8x32xf32>
    %c48_9 = arith.constant 48 : index
    %c32 = arith.constant 32 : index
    %7 = vector.load %arg2[%c48_9, %c32] : memref<56x128xf32, #tpu.memory_space<vmem>>, vector<8x32xf32>
    %c48_10 = arith.constant 48 : index
    %c64 = arith.constant 64 : index
    %8 = vector.load %arg2[%c48_10, %c64] : memref<56x128xf32, #tpu.memory_space<vmem>>, vector<8x1xf32>
    %9 = vector.broadcast %1 : vector<4x1xf32> to vector<4x32xf32>
    %10 = arith.mulf %9, %2 : vector<4x32xf32>
    %cst = arith.constant dense<0.000000e+00> : vector<32xf32>
    %11 = vector.multi_reduction <add>, %10, %cst [0] : vector<4x32xf32> to vector<32xf32>
    %12 = vector.shape_cast %11 : vector<32xf32> to vector<1x32xf32>
    %13 = arith.addf %12, %3 : vector<1x32xf32>
    %cst_11 = arith.constant dense<0.000000e+00> : vector<1x128xf32>
    %14 = tpu.matmul %13, %4, %cst_11 {dimension_numbers = #tpu.dot_dimension_numbers<[1], [0], [0], [1], [0, 0, 1, 1], [], []>} : vector<1x32xf32>, vector<32x128xf32>, vector<1x128xf32> -> vector<1x128xf32>
    %15 = arith.addf %14, %5 : vector<1x128xf32>
    %16 = vector.extract_strided_slice %15 {offsets = [0, 0], sizes = [1, 32], strides = [1, 1]} : vector<1x128xf32> to vector<1x32xf32>
    %17 = vector.extract_strided_slice %15 {offsets = [0, 32], sizes = [1, 32], strides = [1, 1]} : vector<1x128xf32> to vector<1x32xf32>
    %18 = vector.broadcast %16 : vector<1x32xf32> to vector<8x32xf32>
    %19 = arith.mulf %0, %18 : vector<8x32xf32>
    %cst_12 = arith.constant dense<0.000000e+00> : vector<8xf32>
    %20 = vector.multi_reduction <add>, %19, %cst_12 [1] : vector<8x32xf32> to vector<8xf32>
    %21 = vector.shape_cast %20 : vector<8xf32> to vector<8x1xf32>
    %22 = vector.broadcast %21 : vector<8x1xf32> to vector<8x32xf32>
    %23 = arith.mulf %22, %6 : vector<8x32xf32>
    %cst_13 = arith.constant dense<0.000000e+00> : vector<32xf32>
    %24 = vector.multi_reduction <add>, %23, %cst_13 [0] : vector<8x32xf32> to vector<32xf32>
    %25 = vector.shape_cast %24 : vector<32xf32> to vector<1x32xf32>
    %26 = arith.addf %17, %25 : vector<1x32xf32>
    %cst_14 = arith.constant dense<0.000000e+00> : vector<1x128xf32>
    %27 = tpu.matmul %26, %4, %cst_14 {dimension_numbers = #tpu.dot_dimension_numbers<[1], [0], [0], [1], [0, 0, 1, 1], [], []>} : vector<1x32xf32>, vector<32x128xf32>, vector<1x128xf32> -> vector<1x128xf32>
    %28 = arith.addf %27, %5 : vector<1x128xf32>
    %29 = vector.extract_strided_slice %28 {offsets = [0, 64], sizes = [1, 32], strides = [1, 1]} : vector<1x128xf32> to vector<1x32xf32>
    %cst_15 = arith.constant dense<0xFF800000> : vector<1xf32>
    %30 = vector.multi_reduction <maximumf>, %29, %cst_15 [1] : vector<1x32xf32> to vector<1xf32>
    %31 = vector.shape_cast %30 : vector<1xf32> to vector<1x1xf32>
    %32 = vector.broadcast %31 : vector<1x1xf32> to vector<1x32xf32>
    %33 = arith.subf %29, %32 : vector<1x32xf32>
    %34 = math.exp %33 : vector<1x32xf32>
    %cst_16 = arith.constant dense<0.000000e+00> : vector<1xf32>
    %35 = vector.multi_reduction <add>, %34, %cst_16 [1] : vector<1x32xf32> to vector<1xf32>
    %36 = vector.shape_cast %35 : vector<1xf32> to vector<1x1xf32>
    %37 = tpu.reciprocal %36 {approx = true} : vector<1x1xf32> -> vector<1x1xf32>
    %38 = vector.broadcast %37 : vector<1x1xf32> to vector<1x32xf32>
    %39 = arith.mulf %34, %38 : vector<1x32xf32>
    %40 = vector.broadcast %26 : vector<1x32xf32> to vector<8x32xf32>
    %41 = arith.mulf %7, %40 : vector<8x32xf32>
    %cst_17 = arith.constant dense<0.000000e+00> : vector<8xf32>
    %42 = vector.multi_reduction <add>, %41, %cst_17 [1] : vector<8x32xf32> to vector<8xf32>
    %43 = vector.shape_cast %42 : vector<8xf32> to vector<8x1xf32>
    %44 = arith.addf %43, %8 : vector<8x1xf32>
    %45 = vector.broadcast %44 : vector<8x1xf32> to vector<8x32xf32>
    %46 = vector.broadcast %39 : vector<1x32xf32> to vector<8x32xf32>
    %47 = arith.mulf %45, %46 : vector<8x32xf32>
    %48 = arith.addf %0, %47 : vector<8x32xf32>
    %c0_18 = arith.constant 0 : index
    %c0_19 = arith.constant 0 : index
    %49 = vector.load %arg3[%c0_18, %c0_19] : memref<1x128xf32, #tpu.memory_space<vmem>>, vector<1x128xf32>
    tpu.vector_store %arg3[%c0_18, %c0_19], %28 {strides = array<i32>} : memref<1x128xf32, #tpu.memory_space<vmem>>, vector<1x128xf32>,
    %c0_20 = arith.constant 0 : index
    %c0_21 = arith.constant 0 : index
    %50 = vector.load %arg4[%c0_20, %c0_21] : memref<8x32xf32, #tpu.memory_space<vmem>>, vector<8x32xf32>
    tpu.vector_store %arg4[%c0_20, %c0_21], %48 {strides = array<i32>} : memref<8x32xf32, #tpu.memory_space<vmem>>, vector<8x32xf32>,
    return
  }
}

</mosaic_0001>

<bundles_post_ra>
// kernel: step.1
= control target key start
LH: loop header
LB: loop body
LE: loop exit
PB: predicated region body
PF: predicated region fallthrough
CT: control target
= control target key end

     0   :  { %10 = vsyncpa [#allocation3], 0  ;;  %s358_s0 = inlined_call_operand.vmem [shape: f32[4,1], index: 0, kind: input, shape index: {}]   ;;  %s359_s1 = inlined_call_operand.hbm [shape: f32[8,32], index: 1, kind: input, shape index: {}, may-alias: {1,4}]   ;;  %s360_s2 = inlined_call_operand.hbm [shape: f32[56,128], index: 2, kind: input, shape index: {}]   ;;  %s361_s3 = inlined_call_operand.vmem [shape: f32[1,128], index: 3, kind: output, shape index: {0}]   ;;  %s362_s4 = inlined_call_operand.hbm [shape: f32[8,32], index: 4, kind: output, shape index: {1}, may-alias: {1,4}]  }
   0x1   :  { %11 = vsyncpa [#allocation6], 0 }
   0x2   :  { %12 = vsyncpa [#allocation4], 0  ;;  %s20_s17 = sshll.u32 %s359_s1, 4  ;;  %s298_s18 = smov [#allocation2]   ;;  %s21_s17 = int_to_ptr.hbm [resolvable:$true] %s20_s17 }
   0x3   :  { %s22_s19 = sshll.u32 %s298_s18, 4  ;;  %s30_s22 = sshll.u32 %s360_s2, 4  ;;  %s23_s19 = int_to_ptr.vmem [resolvable:$true] %s22_s19  ;;  %s31_s22 = int_to_ptr.hbm [resolvable:$true] %s30_s22 }
   0x4   :  { %25 = dma.hbm_to_vmem [thread:$0]  %s21_s17, 128, %s23_s19, [#allocation3]  }
   0x5   :  { %s299_s23 = smov [#allocation5]   ;;  %s300_s25 = smov 128  }
   0x6   :  { %s32_s24 = sshll.u32 %s299_s23, 4  ;;  %s301_s26 = smov 8   ;;  %s33_s24 = int_to_ptr.vmem [resolvable:$true] %s32_s24 }
   0x7   :  { %38 = dma.hbm_to_vmem [thread:$0]  %s31_s22, 896, %s33_s24, [#allocation6], %s300_s25, %s300_s25, %s301_s26  }
   0x8   :  { %292 = dma.done.wait [#allocation3], 128  }
   0x9   :  { %293 = vsyncadd [#allocation3], 4294967168 }
   0xa   :  { %294 = dma.done.wait [#allocation6], 896  }
   0xb   :  { %295 = vsyncadd [#allocation6], 4294966400  ;;  %v302_v0 = vmov 0   ;;  %v48_v1 = vld [vmem:[%s358_s0] sm:$0xf]  ;;  %v54_v2 = vld [vmem:[#allocation5 + $0x20] sm:$0xff] }
   0xc   :  { %214 = vset.pattern.permute.xlu0 %v302_v0  ;;  %88 = vmatpush.msra.mxu0 %v54_v2  ;;  %v53_v3 = vld [vmem:[#allocation5 + $0x18] sm:$0xff]  ;;  %v52_v4 = vld [vmem:[#allocation5 + $0x10] sm:$0xff]  ;;  %v51_v5 = vld [vmem:[#allocation5 + $0x8] sm:$0xff]  ;;  %vm63_vm0 = vcmask 257024   ;;  %vm72_vm1 = vcmask 261120   ;;  %s303_s0 = smov 32  }
   0xd   :  { %59 = vperm.xlu0 %214, %v48_v1   ;;  %131 = vmatpush.msra.mxu1 %v54_v2  ;;  %v49_v6 = vld [vmem:[#allocation5] sm:$0xf]  ;;  %v50_v15 = vld [vmem:[#allocation5 + $0x4] sm:$0x1]  ;;  %v55_v18 = vld [vmem:[#allocation5 + $0x28] sm:$0x1] }
   0xe   :  { %89 = vmatpush.msra.mxu0 %v53_v3  ;;  %v343_v21 = vld [vmem:[#allocation2] sm:$0xff]  ;;  %v56_v25 = vld [vmem:[#allocation5 + $0x30] sm:$0xff]  ;;  %s304_s2 = smov 96   ;;  %vm139_vm2 = vcmask 778752   ;;  %s305_s30 = smov 64   ;;  %vm150_vm3 = vcmask 253952  }
   0xf   :  { %132 = vmatpush.msra.mxu1 %v53_v3  ;;  %v306_v51 = vmov 64   ;;  %s189_s8 = sshll.u32 %s362_s4, 4  ;;  %s190_s8 = int_to_ptr.hbm [resolvable:$true] %s189_s8 }
  0x10   :  { %90 = vmatpush.msra.mxu0 %v52_v4 }
  0x11   :  { %133 = vmatpush.msra.mxu1 %v52_v4 }
  0x12   :  { %91 = vmatpush.msra.mxu0 %v51_v5 }
  0x13   :  { %134 = vmatpush.msra.mxu1 %v51_v5 }
  0x15   :  { %215 = vset.pattern.permute.xlu0 %v306_v51 }
  0x7f   :  { %v60_v7 = vpop.permute.xlu0 %59 }
  0x80   :  { %v62_v8 = vmul.f32 %v60_v7, %v49_v6 }
  0x82   :  { %v64_v9 = vsel %vm63_vm0, %v62_v8, 0.0 }
  0x83   :  { %v65_v10 = vrot.slane %v64_v9, 4 }
  0x85   :  { %v66_v11 = vadd.f32 %v65_v10, %v64_v9 }
  0x87   :  { %v67_v12 = vrot.slane %v66_v11, 2 }
  0x89   :  { %v68_v13 = vadd.f32 %v67_v12, %v66_v11 }
  0x8b   :  { %v69_v14 = vrot.slane %v68_v13, 1 }
  0x8d   :  { %v70_v16 = vadd.f32 %v69_v14, %v68_v13 }
  0x8f   :  { %v71_v17 = vadd.f32 %v70_v16, %v50_v15 }
  0x91   :  { %202 = vmatmul.msk.f32.vlgmr.msra.gmra.mxu0 %vm72_vm1, %v71_v17 }
 0x10e   :  { %v93_v19 = vpop.f32.mrf.mxu0 }
 0x10f   :  { %v94_v20 = vadd.f32 %v93_v19, %v55_v18 }
 0x111   :  { %v96_v22 = vperm.slane %v94_v20, 0 }
 0x113   :  { %v97_v23 = vmul.f32 %v96_v22, %v343_v21 }
 0x115   :  { %v98_v24 = vsel %vm72_vm1, %v97_v23, 0.0 }
 0x116   :  { %99 = vadd.xlane.f32.xlu0 %v98_v24 }
 0x189   :  { %v100_v26 = vpop.xlane.xlu0 %99 }
 0x18a   :  { %v101_v27 = vmul.f32 %v100_v26, %v56_v25 }
 0x18c   :  { %v102_v28 = vsel %vm72_vm1, %v101_v27, 0.0 }
 0x18d   :  { %v103_v29 = vrot.slane %v102_v28, 4 }
 0x18f   :  { %v104_v30 = vadd.f32 %v103_v29, %v102_v28 }
 0x191   :  { %v105_v31 = vrot.slane %v104_v30, 2 }
 0x193   :  { %v106_v32 = vadd.f32 %v105_v31, %v104_v30 }
 0x195   :  { %v107_v33 = vrot.slane %v106_v32, 1 }
 0x197   :  { %v108_v34 = vadd.f32 %v107_v33, %v106_v32 }
 0x199   :  { %110 = vrot.lane.b32.xlu1 %v108_v34, %s303_s0 }
 0x20b   :  { %v111_v35 = vpop.permute.xlu1 %110 }
 0x20c   :  { %v113_v36 = vadd.f32 %v111_v35, %v94_v20 }
 0x20e   :  { %115 = vrot.lane.b32.xlu1 %v113_v36, %s304_s2  ;;  %v156_v41 = vperm.slane %v113_v36, 0 }
 0x210   :  { %v157_v42 = vmul.f32 %v156_v41, %v56_v25 }
 0x280   :  { %v116_v37 = vpop.permute.xlu1 %115 }
 0x281   :  { %203 = vmatmul.msk.f32.vlgmr.msra.gmra.mxu1 %vm72_vm1, %v116_v37 }
 0x2fe   :  { %v136_v38 = vpop.f32.mrf.mxu1 }
 0x2ff   :  { %v137_v39 = vadd.f32 %v136_v38, %v55_v18 }
 0x301   :  { %178 = vst [vmem:[%s361_s3] sm:$0x1] %v137_v39  ;;  %v140_v40 = vsel %vm139_vm2, %v137_v39, -inf  ;;  %s307_s3 = smov [#allocation7]  }
 0x302   :  { %141 = vmax.xlane.f32.xlu2 %v140_v40  ;;  %s187_s5 = sshll.u32 %s307_s3, 4  ;;  %s188_s5 = int_to_ptr.vmem [resolvable:$true] %s187_s5 }
 0x31a   :  { %159 = vrot.lane.b32.xlu2 %v157_v42, %s304_s2 }
 0x375   :  { %v142_v43 = vpop.xlane.xlu2 %141 }
 0x376   :  { %v143_v44 = vsub.f32 %v137_v39, %v142_v43 }
 0x378   :  { %v144_v45 = vmul.f32 1.442695, %v143_v44 }
 0x37a   :  { %216 = vpow2.f32 %v144_v45 }
 0x37d   :  { %v160_v47 = vpop.permute.xlu2 %159 }
 0x37e   :  { %v162_v48 = vsel %vm72_vm1, %v160_v47, 0.0 }
 0x380   :  { %v217_v46 = vpop.eup %216 }
 0x381   :  { %147 = vrot.lane.b32.xlu1 %v217_v46, %s305_s30 }
 0x3ab   :  { %163 = vadd.xlane.f32.xlu1 %v162_v48 }
 0x3f3   :  { %v148_v49 = vpop.permute.xlu1 %147 }
 0x3f4   :  { %v151_v50 = vsel %vm150_vm3, %v148_v49, 0.0 }
 0x3f5   :  { %152 = vadd.xlane.f32.xlu2 %v151_v50 }
 0x41e   :  { %v164_v52 = vpop.xlane.xlu1 %163 }
 0x41f   :  { %v165_v53 = vadd.f32 %v164_v52, %v56_v25 }
 0x421   :  { %168 = vperm.xlu0 %215, %v165_v53  }
 0x468   :  { %v153_v54 = vpop.xlane.xlu2 %152 }
 0x469   :  { %218 = vrcp.f32 %v153_v54 }
 0x46f   :  { %v219_v55 = vpop.eup %218 }
 0x470   :  { %v155_v56 = vmul.f32 %v219_v55, %v217_v46 }
 0x472   :  { %v171_v57 = vperm.slane %v155_v56, 0 }
 0x493   :  { %v169_v58 = vpop.permute.xlu0 %168 }
 0x494   :  { %v172_v59 = vmul.f32 %v171_v57, %v169_v58 }
 0x496   :  { %174 = vrot.lane.b32.xlu1 %v172_v59, %s305_s30 }
 0x508   :  { %v175_v60 = vpop.permute.xlu1 %174 }
 0x509   :  { %v177_v61 = vadd.f32 %v175_v60, %v343_v21 }
 0x50b   :  { %179 = vst.msk [vmem:[#allocation7] sm:$0xff] %vm72_vm1, %v177_v61 }
 0x50c   :  { %192 = dma.vmem_to_hbm [thread:$0]  %s188_s5, 128, %s190_s8, [#allocation4]  }
 0x50d   :  { %296 = dma.done.wait [#allocation4], 128  }
 0x50e   :  { %297 = vsyncadd [#allocation4], 4294967168 }
 0x50f   :  { %199 = vsyncpa [#allocation3], 1 }
 0x510   :  { %200 = vsyncpa [#allocation6], 1 }
 0x511   :  { %201 = vsyncpa [#allocation4], 1 }

</bundles_post_ra>
